<compile_context>
chip_gen: v5e
topology: v5e:2x2
jax: 0.10.0
libtpu: 0.0.40
codegen_flags: <defaults>
</compile_context>

<pallas_src>
import math
import numpy as np
import jax
import jax.numpy as jnp
from jax.experimental import pallas as pl
from jax.experimental.pallas import tpu as pltpu


# ---------------------------------------------------------------------------
# One-time init (mirrors the torch __init__, host-side numpy).
# ---------------------------------------------------------------------------
def build_pe(dim: int, max_len: int = 5000, n: int = 3) -> np.ndarray:
    """Mirror HypercomplexPositionalEncoding.__init__ exactly (including the
    overwrite-order quirk where cos columns can be overwritten by the next
    iteration's sin for n=3)."""
    pe = np.zeros((max_len, dim), dtype=np.float32)
    position = np.arange(0, max_len, dtype=np.float32)[:, None]            # (max_len, 1)
    div_term = np.exp(np.arange(0, dim, 2, dtype=np.float32)
                      * (-math.log(10000.0) / dim))                        # (ceil(dim/2),)
    for i in range(n):
        phase_shift = 2.0 * math.pi * i / n
        pe[:, i::n] = np.sin(position * div_term + phase_shift)
        if i * 2 + 1 < dim:
            pe[:, i * 2 + 1::n] = np.cos(position * div_term + phase_shift)
    return pe[None]                                                         # (1, max_len, dim)


def prepare_pe_table(pe, seq_len: int, dtype) -> jax.Array:
    """One-time prep: slice to seq_len, cast to the activation dtype, flatten
    (seq_len, D) into a single lane-dense axis.  Returns shape (1, seq_len*D)."""
    max_len, dim = pe.shape[1], pe.shape[2]
    assert seq_len <= max_len, f"seq_len={seq_len} exceeds pe max_len={max_len}"
    pe_sliced = jnp.asarray(pe[:, :seq_len, :], dtype=dtype)
    return pe_sliced.reshape(1, seq_len * dim)


# ---------------------------------------------------------------------------
# Kernel + tiling.
# ---------------------------------------------------------------------------
def _add_pe_kernel(x_ref, pe_ref, o_ref):
    # (tb, tc) + (1, tc) broadcast add on the VPU; lane-dense full-width stores.
    o_ref[...] = x_ref[...] + pe_ref[...]


_TILE_BUDGET_BYTES = 6 * 1024 * 1024       # per x/out tile (single buffer)
_VMEM_LIMIT_CAP = 48 * 1024 * 1024         # safe on v5e/v6e (128 MiB) and v7x (64 MiB)


def _choose_tiles(B: int, C: int, itemsize: int,
                  tile_budget_bytes: int = _TILE_BUDGET_BYTES):
    """Pick a layout-legal (tb, tc) block for a lane-dense (B, C) broadcast add.

    tb is a multiple of the dtype-native sublane quantum (8/f32, 16/bf16, 32/int8)
    or equals B; tc is a multiple of 128 or equals C.  Partial tail blocks are
    handled by a cdiv grid, so no fallback can silently overshoot the budget.
    """
    quantum = max(8, 32 // max(1, itemsize))            # dtype-native sublane packing
    budget_elems = max(quantum * 128, tile_budget_bytes // itemsize)

    if B * C <= budget_elems:
        # Whole array fits in one block.
        tb, tc = B, C
        # v7x has 2 TensorCores: give the (parallel) row axis >=2 blocks when the
        # problem is big enough to be worth the extra pipeline steps.
        if B >= 2 * quantum and B * C * itemsize >= (1 << 20):
            tb_half = (B // 2 // quantum) * quantum
            if tb_half >= quantum:
                tb = tb_half
        return tb, tc, quantum

    if quantum * C <= budget_elems:
        # Keep full rows, tile only the batch axis.
        tb = (budget_elems // C) // quantum * quantum   # >= quantum by construction
        tb = min(tb, B)
        if tb < B:
            tb = max(quantum, (tb // quantum) * quantum)
        return tb, C, quantum

    # Even `quantum` full rows exceed the budget: tile both axes.
    tb = B if B <= quantum else quantum
    tc_cap = (budget_elems // tb) // 128 * 128          # >= 128 by construction
    tc = C if tc_cap >= C else max(128, tc_cap)
    return tb, tc, quantum


def hypercomplex_pos_encoding(x: jax.Array, pe_flat: jax.Array) -> jax.Array:
    """forward(x) = x + pe[:, :L]  (pe broadcast over batch).

    x:       (B, L, D)
    pe_flat: (1, L*D) — pre-sliced / cast / flattened table from prepare_pe_table.
    """
    B, L, D = x.shape
    C = L * D
    assert pe_flat.shape == (1, C), f"pe_flat shape {pe_flat.shape} != (1, {C})"
    assert pe_flat.dtype == x.dtype, "pe table must be prepared in x.dtype"

    itemsize = jnp.dtype(x.dtype).itemsize
    # Lane-dense layout: collapse (L, D) into the lane axis (layout plumbing only).
    x2 = x.reshape(B, C)

    tb, tc, _ = _choose_tiles(B, C, itemsize)

    # Full double-buffered working set: 2*x + 2*out + 2*pe tiles.
    working_bytes = (4 * tb * tc + 2 * tc) * itemsize
    vmem_limit = int(min(_VMEM_LIMIT_CAP, max(2 * working_bytes, 8 * 1024 * 1024)))
    assert working_bytes <= vmem_limit, (
        f"tile working set {working_bytes} B exceeds vmem limit {vmem_limit} B")

    # Column (lane) axis OUTER, row (batch) axis INNER: the pe block index (0, j)
    # is constant across the inner loop, so its DMA is skipped after the first step.
    grid = (pl.cdiv(C, tc), pl.cdiv(B, tb))

    cost = pl.CostEstimate(
        flops=B * C,
        transcendentals=0,
        bytes_accessed=(2 * B * C + C) * itemsize,
    )

    out2 = pl.pallas_call(
        _add_pe_kernel,
        out_shape=jax.ShapeDtypeStruct((B, C), x.dtype),
        grid=grid,
        in_specs=[
            pl.BlockSpec((tb, tc), lambda j, i: (i, j)),
            pl.BlockSpec((1, tc), lambda j, i: (0, j)),   # resident over inner loop
        ],
        out_specs=pl.BlockSpec((tb, tc), lambda j, i: (i, j)),
        compiler_params=pltpu.CompilerParams(
            dimension_semantics=("parallel", "parallel"),
            vmem_limit_bytes=vmem_limit,
        ),
        cost_estimate=cost,
    )(x2, pe_flat)

    return out2.reshape(B, L, D)


# ---------------------------------------------------------------------------
# Demo / self-check.
# ---------------------------------------------------------------------------
if __name__ == "__main__":
    # Small shapes consistent with the module: dim=2, n=3 (the only dim the torch
    # __init__ slice-assignment accepts for n=3), seq=8, batch=2.
    dim, n, max_len = 2, 3, 64
    B, L = 2, 8

    key = jax.random.PRNGKey(0)
    x = jax.random.normal(key, (B, L, dim), dtype=jnp.float32)

    pe = build_pe(dim, max_len=max_len, n=n)                  # (1, max_len, dim), f32
    pe_flat = prepare_pe_table(pe, seq_len=L, dtype=x.dtype)  # (1, L*dim), one-time prep

    out = hypercomplex_pos_encoding(x, pe_flat)
    out = jax.block_until_ready(out)

    # Pure-JAX reference of the forward pass.
    ref = x + jnp.asarray(pe[:, :L, :], dtype=x.dtype)
    assert out.shape == (B, L, dim)
    assert out.dtype == x.dtype
    assert jnp.allclose(out, ref, atol=1e-6), "Pallas output mismatch vs reference"

    print("KERNEL_OK")
</pallas_src>

<mosaic_0001>
module attributes {stable_mosaic.version = 11 : i64} {
  func.func @_add_pe_kernel(%arg0: i32, %arg1: i32, %arg2: memref<2x16xf32, #tpu.memory_space<vmem>>, %arg3: memref<1x16xf32, #tpu.memory_space<vmem>>, %arg4: memref<2x16xf32, #tpu.memory_space<vmem>>) attributes {dimension_semantics = [#tpu.dimension_semantics<parallel>, #tpu.dimension_semantics<parallel>], iteration_bounds = array<i64: 1, 1>, scalar_prefetch = 0 : i64, scratch_operands = 0 : i64, tpu.core_type = #tpu.core_type<tc>, window_params = [{transform_indices = @transform_0, window_bounds = array<i64: 2, 16>}, {transform_indices = @transform_1, window_bounds = array<i64: 1, 16>}, {transform_indices = @transform_2, window_bounds = array<i64: 2, 16>}]} {
    %c0 = arith.constant 0 : index
    %c0_0 = arith.constant 0 : index
    %0 = vector.load %arg2[%c0, %c0_0] : memref<2x16xf32, #tpu.memory_space<vmem>>, vector<2x16xf32>
    %c0_1 = arith.constant 0 : index
    %c0_2 = arith.constant 0 : index
    %1 = vector.load %arg3[%c0_1, %c0_2] : memref<1x16xf32, #tpu.memory_space<vmem>>, vector<1x16xf32>
    %2 = vector.broadcast %1 : vector<1x16xf32> to vector<2x16xf32>
    %3 = arith.addf %0, %2 : vector<2x16xf32>
    %c0_3 = arith.constant 0 : index
    %c0_4 = arith.constant 0 : index
    %4 = vector.load %arg4[%c0_3, %c0_4] : memref<2x16xf32, #tpu.memory_space<vmem>>, vector<2x16xf32>
    tpu.vector_store %arg4[%c0_3, %c0_4], %3 {strides = array<i32>} : memref<2x16xf32, #tpu.memory_space<vmem>>, vector<2x16xf32>,
    return
  }
  func.func @transform_0(%arg0: i32, %arg1: i32) -> (i32, i32) {
    %c0_i32 = arith.constant 0 : i32
    return %arg1, %arg0 : i32, i32
  }
  func.func @transform_1(%arg0: i32, %arg1: i32) -> (i32, i32) {
    %c0_i32 = arith.constant 0 : i32
    %c0_i32_0 = arith.constant 0 : i32
    return %c0_i32, %arg0 : i32, i32
  }
  func.func @transform_2(%arg0: i32, %arg1: i32) -> (i32, i32) {
    %c0_i32 = arith.constant 0 : i32
    return %arg1, %arg0 : i32, i32
  }
}

</mosaic_0001>

<bundles_post_ra>
// kernel: tpu_custom_call.1
= control target key start
LH: loop header
LB: loop body
LE: loop exit
PB: predicated region body
PF: predicated region fallthrough
CT: control target
= control target key end

     0   :  { %7 = vsyncpa [#allocation3], 0  ;;  %s175_s0 = inlined_call_operand.hbm [shape: f32[2,16], index: 0, kind: input, shape index: {}]   ;;  %s176_s1 = inlined_call_operand.hbm [shape: f32[1,16], index: 1, kind: input, shape index: {}]   ;;  %s177_s2 = inlined_call_operand.hbm [shape: f32[2,16], index: 2, kind: output, shape index: {}]  }
   0x1   :  { %8 = vsyncpa [#allocation6], 0 }
   0x2   :  { %9 = vsyncpa [#allocation4], 0  ;;  %s15_s11 = sshll.u32 %s175_s0, 4  ;;  %s148_s12 = smov [#allocation2]   ;;  %s16_s11 = int_to_ptr.hbm [resolvable:$true] %s15_s11 }
   0x3   :  { %s17_s13 = sshll.u32 %s148_s12, 4  ;;  %s26_s16 = sshll.u32 %s176_s1, 4  ;;  %s18_s13 = int_to_ptr.vmem [resolvable:$true] %s17_s13  ;;  %s27_s16 = int_to_ptr.hbm [resolvable:$true] %s26_s16 }
   0x4   :  { %20 = dma.hbm_to_vmem [thread:$0]  %s16_s11, 32, %s18_s13, [#allocation3]  }
   0x5   :  { %s149_s17 = smov [#allocation5]  }
   0x6   :  { %s28_s18 = sshll.u32 %s149_s17, 4  ;;  %s29_s18 = int_to_ptr.vmem [resolvable:$true] %s28_s18 }
   0x7   :  { %31 = dma.hbm_to_vmem [thread:$0]  %s27_s16, 16, %s29_s18, [#allocation6]  }
   0x8   :  { %142 = dma.done.wait [#allocation3], 32  }
   0x9   :  { %143 = vsyncadd [#allocation3], 4294967264 }
   0xa   :  { %144 = dma.done.wait [#allocation6], 16  }
   0xb   :  { %145 = vsyncadd [#allocation6], 4294967280  ;;  %s150_s19 = smov [#allocation7]   ;;  %s55_s22 = sshll.u32 %s177_s2, 4  ;;  %v40_v0 = vld [vmem:[#allocation2] sm:$0x3]  ;;  %s56_s22 = int_to_ptr.hbm [resolvable:$true] %s55_s22 }
   0xc   :  { %s53_s0 = sshll.u32 %s150_s19, 4  ;;  %v69_v1 = vld [vmem:[#allocation5] ss:$0 sm:$0xff]  ;;  %vm46_vm0 = vcmask 123904   ;;  %s54_s0 = int_to_ptr.vmem [resolvable:$true] %s53_s0 }
   0xd   :  { %v45_v2 = vadd.f32 %v69_v1, %v40_v0 }
   0xf   :  { %47 = vst.msk [vmem:[#allocation7] sm:$0x3] %vm46_vm0, %v45_v2 }
  0x10   :  { %58 = dma.vmem_to_hbm [thread:$0]  %s54_s0, 32, %s56_s22, [#allocation4]  }
  0x11   :  { %146 = dma.done.wait [#allocation4], 32  }
  0x12   :  { %147 = vsyncadd [#allocation4], 4294967264 }
  0x13   :  { %63 = vsyncpa [#allocation3], 1 }
  0x14   :  { %64 = vsyncpa [#allocation6], 1 }
  0x15   :  { %65 = vsyncpa [#allocation4], 1 }

</bundles_post_ra>
